<compile_context>
chip_gen: v7x
topology: tpu7x:2x2x1
jax: 0.10.0
libtpu: 0.0.40
codegen_flags: <defaults>
</compile_context>

<pallas_src>
import jax
import jax.numpy as jnp
from jax.experimental import pallas as pl
from jax.experimental.pallas import tpu as pltpu

NEG_INF = -1e30  # finite "minus infinity" so exp/max never produce NaNs


def _round_up(v, m):
    return ((v + m - 1) // m) * m


def gap_attn_kernel(x_hbm, wqkv_hbm, wo_hbm, bqkv_ref, bo_ref,
                    hcol_ref, hrow_ref, src_ref, dst_ref, dst_row_ref,
                    out_ref,
                    x_s, qkv_s, mhead_s, m_s, l_s):
    t = pl.program_id(0)
    n_tiles = pl.num_programs(0)
    n_pad, h_pad = out_ref.shape
    tile_e = src_ref.shape[0]

    # ---- one-time init: copy x, fused q|k|v projection, state reset ------------
    @pl.when(t == 0)
    def _init():
        # x stays resident (needed again for the residual at finalize).
        pltpu.sync_copy(x_hbm, x_s)

        def qkv_proj(wqkv_s):
            # wqkv only lives inside this scope; the region is reused by the
            # finalize-time wo scope (run_scoped region stack).
            pltpu.sync_copy(wqkv_hbm, wqkv_s)
            x_bf = x_s[...].astype(jnp.bfloat16)
            qkv = jnp.dot(x_bf, wqkv_s[...],
                          preferred_element_type=jnp.float32) + bqkv_ref[...]
            qkv_s[...] = qkv.astype(jnp.bfloat16)

        pl.run_scoped(qkv_proj, pltpu.VMEM((h_pad, 3 * h_pad), jnp.bfloat16))

        # head-block map built in-kernel from two tiny head-id vectors
        # (f32 so the per-head score reduction keeps full precision).
        mhead_s[...] = (hcol_ref[...] == hrow_ref[...]).astype(jnp.float32)

        out_ref[...] = jnp.zeros_like(out_ref)        # output block == accumulator
        m_s[...] = jnp.full(m_s.shape, NEG_INF, jnp.float32)
        l_s[...] = jnp.zeros(l_s.shape, jnp.float32)

    # ---- per-edge-tile work -----------------------------------------------------
    src_ids = src_ref[...]                       # [tile_e, 1] int32 (-1 = padding)
    dst_ids = dst_ref[...]                       # [tile_e, 1] int32 (-1 = padding)
    dst_ids_row = dst_row_ref[...]               # [1, tile_e] int32 (-1 = padding)
    valid = dst_ids >= 0                         # [tile_e, 1] bool

    # one-hot gather tiles built in-register (no HBM one-hot traffic)
    node_lane = jax.lax.broadcasted_iota(jnp.int32, (tile_e, n_pad), 1)
    src_oh = (src_ids == node_lane).astype(jnp.bfloat16)        # [tile_e, n_pad]
    dst_oh = (dst_ids == node_lane).astype(jnp.bfloat16)        # [tile_e, n_pad]
    # scatter one-hot, already in [n_pad, tile_e] orientation
    node_sub = jax.lax.broadcasted_iota(jnp.int32, (n_pad, tile_e), 0)
    dst_oh_t = (dst_ids_row == node_sub).astype(jnp.bfloat16)   # [n_pad, tile_e]

    q = qkv_s[:, 0:h_pad]                        # [n_pad, h_pad] bf16 (scale folded)
    k = qkv_s[:, h_pad:2 * h_pad]
    v = qkv_s[:, 2 * h_pad:3 * h_pad]

    q_dst = jnp.dot(dst_oh, q, preferred_element_type=jnp.float32)   # [tile_e, h_pad]
    k_src = jnp.dot(src_oh, k, preferred_element_type=jnp.float32)
    v_src = jnp.dot(src_oh, v, preferred_element_type=jnp.float32)

    # per-head score, broadcast to every channel of that head (f32 reduction)
    s_full = jnp.dot(q_dst * k_src, mhead_s[...],
                     preferred_element_type=jnp.float32)              # [tile_e, h_pad]
    s_full = jnp.where(valid, s_full, NEG_INF)

    # online softmax over the edge dimension (per head / per channel)
    m_prev = m_s[...]                                                 # [1, h_pad]
    m_new = jnp.maximum(m_prev, jnp.max(s_full, axis=0, keepdims=True))
    alpha = jnp.exp(m_prev - m_new)                                   # [1, h_pad]
    p = jnp.where(valid, jnp.exp(s_full - m_new), 0.0)                # [tile_e, h_pad]

    l_s[...] = alpha * l_s[...] + jnp.sum(p, axis=0, keepdims=True)
    m_s[...] = m_new

    # scatter-add over destination nodes, accumulated directly into out_ref
    pv = (p * v_src).astype(jnp.bfloat16)
    scatter = jnp.dot(dst_oh_t, pv, preferred_element_type=jnp.float32)
    out_ref[...] = alpha * out_ref[...] + scatter

    # ---- finalize: normalize, output projection, residual ----------------------
    @pl.when(t == n_tiles - 1)
    def _finalize():
        def out_proj(wo_s):
            pltpu.sync_copy(wo_hbm, wo_s)
            attended = out_ref[...] * pl.reciprocal(l_s[...], approx=True)
            proj = jnp.dot(attended.astype(jnp.bfloat16), wo_s[...],
                           preferred_element_type=jnp.float32)
            out_ref[...] = x_s[...] + proj + bo_ref[...]

        pl.run_scoped(out_proj, pltpu.VMEM((h_pad, h_pad), jnp.bfloat16))


def _vmem_limit_bytes(n_pad, h_pad, tile_e):
    resident = (n_pad * h_pad * 4              # x_s (f32)
                + n_pad * 3 * h_pad * 2        # qkv_s (bf16)
                + h_pad * h_pad * 4            # mhead_s (f32)
                + 2 * h_pad * 4                # m_s + l_s
                + 2 * n_pad * h_pad * 4)       # output block (assume 2 buffers)
    scoped = max(h_pad * 3 * h_pad * 2,        # wqkv scope (t==0)
                 h_pad * h_pad * 2)            # wo scope (finalize)
    per_tile = (3 * tile_e * n_pad * 2         # one-hot temporaries (bf16)
                + 2 * tile_e * n_pad * 4       # iota / compare temporaries
                + 6 * tile_e * h_pad * 4       # gathered rows, scores, p
                + 2 * (3 * tile_e + 4 * h_pad) * 4)  # small double-buffered inputs
    est = resident + scoped + per_tile
    try:
        cap = int(pltpu.get_tpu_info().vmem_capacity_bytes)
    except Exception:                          # interpret mode / older API
        cap = 64 * 1024 * 1024                 # conservative (v7x physical VMEM)
    return max(32 * 1024 * 1024, min(int(1.5 * est) + (4 << 20), int(0.8 * cap)))


def gap_aware_attention(x, gap_edge_index, params, heads, *, tile_e=256):
    """x: [N, hidden] f32; gap_edge_index: [2, E] int32."""
    n, hidden = x.shape
    e = int(gap_edge_index.shape[1])
    if e == 0:                                   # PyTorch: early return, no gap edges
        return x
    head_dim = hidden // heads
    scale = 1.0 / (head_dim ** 0.5)

    # lane/sublane-dense padding
    h_pad = _round_up(hidden, 128)
    n_pad = _round_up(n, 8)

    # tile_e validation: single tile may be any multiple of 8 (full-array blocks);
    # multiple tiles require a 128-multiple so the (1, tile_e) block is lane-legal.
    e_pad8 = _round_up(e, 8)
    if e_pad8 <= tile_e:
        tile_e = e_pad8
        e_pad = e_pad8
    else:
        tile_e = _round_up(tile_e, 128)
        e_pad = _round_up(e, tile_e)
    num_tiles = e_pad // tile_e

    f32, bf16 = jnp.float32, jnp.bfloat16
    dh = h_pad - hidden

    def pad_w(w):
        return jnp.pad(w, ((0, dh), (0, dh)))

    def pad_b(b):
        return jnp.pad(b, ((0, 0), (0, dh)))

    # softmax scale folded into the q projection (weight AND bias)
    wq = pad_w(params["wq"] * scale)
    bq = pad_b(params["bq"] * scale)
    wk, bk = pad_w(params["wk"]), pad_b(params["bk"])
    wv, bv = pad_w(params["wv"]), pad_b(params["bv"])
    wqkv = jnp.concatenate([wq, wk, wv], axis=1).astype(bf16)     # [h_pad, 3*h_pad]
    bqkv = jnp.concatenate([bq, bk, bv], axis=1).astype(f32)      # [1, 3*h_pad]
    wo = pad_w(params["wo"]).astype(bf16)                         # [h_pad, h_pad]
    bo = pad_b(params["bo"]).astype(f32)                          # [1, h_pad]

    # tiny per-channel head ids (head-block map is built in-kernel from these)
    head_id = (jnp.arange(h_pad, dtype=jnp.int32) // head_dim).astype(jnp.int32)
    head_row = head_id.reshape(1, h_pad)
    head_col = head_id.reshape(h_pad, 1)

    x_p = jnp.pad(x.astype(f32), ((0, n_pad - n), (0, dh)))

    pad_ids = -jnp.ones((e_pad - e,), jnp.int32)
    src_col = jnp.concatenate([gap_edge_index[0].astype(jnp.int32), pad_ids]
                              ).reshape(e_pad, 1)
    dst_col = jnp.concatenate([gap_edge_index[1].astype(jnp.int32), pad_ids]
                              ).reshape(e_pad, 1)
    dst_row = dst_col.reshape(1, e_pad)

    flops = int(2 * n_pad * h_pad * 3 * h_pad                     # fused qkv proj
                + num_tiles * (3 * 2 * tile_e * n_pad * h_pad     # gathers
                               + 2 * tile_e * h_pad * h_pad       # head scores
                               + 2 * tile_e * n_pad * h_pad)      # scatter
                + 2 * n_pad * h_pad * h_pad)                      # out proj
    transcendentals = int(num_tiles * (tile_e + 1) * h_pad)
    bytes_accessed = int(x_p.size * 4 + wqkv.size * 2 + bqkv.size * 4
                         + wo.size * 2 + bo.size * 4
                         + (head_row.size + head_col.size) * 4
                         + (src_col.size + dst_col.size + dst_row.size) * 4
                         + n_pad * h_pad * 4)

    out_p = pl.pallas_call(
        gap_attn_kernel,
        out_shape=jax.ShapeDtypeStruct((n_pad, h_pad), jnp.float32),
        grid_spec=pltpu.PrefetchScalarGridSpec(
            num_scalar_prefetch=0,
            grid=(num_tiles,),
            in_specs=[
                pl.BlockSpec(memory_space=pl.ANY),                     # x (HBM)
                pl.BlockSpec(memory_space=pl.ANY),                     # wqkv (HBM)
                pl.BlockSpec(memory_space=pl.ANY),                     # wo (HBM)
                pl.BlockSpec((1, 3 * h_pad), lambda t: (0, 0)),        # bqkv
                pl.BlockSpec((1, h_pad), lambda t: (0, 0)),            # bo
                pl.BlockSpec((h_pad, 1), lambda t: (0, 0)),            # head ids (col)
                pl.BlockSpec((1, h_pad), lambda t: (0, 0)),            # head ids (row)
                pl.BlockSpec((tile_e, 1), lambda t: (t, 0)),           # src ids
                pl.BlockSpec((tile_e, 1), lambda t: (t, 0)),           # dst ids (col)
                pl.BlockSpec((1, tile_e), lambda t: (0, t)),           # dst ids (row)
            ],
            out_specs=pl.BlockSpec((n_pad, h_pad), lambda t: (0, 0)),
            scratch_shapes=[
                pltpu.VMEM((n_pad, h_pad), jnp.float32),        # x (resident copy)
                pltpu.VMEM((n_pad, 3 * h_pad), jnp.bfloat16),   # q|k|v
                pltpu.VMEM((h_pad, h_pad), jnp.float32),        # head-block map
                pltpu.VMEM((1, h_pad), jnp.float32),            # running max
                pltpu.VMEM((1, h_pad), jnp.float32),            # running sum
            ]),
        compiler_params=pltpu.CompilerParams(
            dimension_semantics=("arbitrary",),
            vmem_limit_bytes=_vmem_limit_bytes(n_pad, h_pad, tile_e)),
        cost_estimate=pl.CostEstimate(flops=flops,
                                      transcendentals=transcendentals,
                                      bytes_accessed=bytes_accessed),
    )(x_p, wqkv, wo, bqkv, bo, head_col, head_row, src_col, dst_col, dst_row)

    return out_p[:n, :hidden]


def reference(x, gap_edge_index, params, heads):
    """Pure-JAX f32 mirror of the PyTorch forward, for correctness check."""
    n, hidden = x.shape
    head_dim = hidden // heads
    src, dst = gap_edge_index[0], gap_edge_index[1]
    q = (x @ params["wq"] + params["bq"]).reshape(n, heads, head_dim)
    k = (x @ params["wk"] + params["bk"]).reshape(n, heads, head_dim)
    v = (x @ params["wv"] + params["bv"]).reshape(n, heads, head_dim)
    scores = (q[dst] * k[src]).sum(-1) / head_dim ** 0.5               # [E, heads]
    w = jax.nn.softmax(scores, axis=0)
    attended = jnp.zeros_like(v).at[dst].add(w[:, :, None] * v[src])
    attended = attended.reshape(n, hidden)
    return x + attended @ params["wo"] + params["bo"]


def init_params(key, hidden):
    ks = jax.random.split(key, 8)

    def lin(kw, kb):
        w = jax.random.normal(kw, (hidden, hidden), jnp.float32) * 0.1  # [in, out]
        b = jax.random.normal(kb, (1, hidden), jnp.float32) * 0.01
        return w, b

    wq, bq = lin(ks[0], ks[1])
    wk, bk = lin(ks[2], ks[3])
    wv, bv = lin(ks[4], ks[5])
    wo, bo = lin(ks[6], ks[7])
    return dict(wq=wq, bq=bq, wk=wk, bk=bk, wv=wv, bv=bv, wo=wo, bo=bo)


if __name__ == "__main__":
    N, HIDDEN, HEADS, E = 16, 32, 8, 8

    key = jax.random.PRNGKey(0)
    k_x, k_src, k_dst, k_p = jax.random.split(key, 4)

    x = jax.random.normal(k_x, (N, HIDDEN), jnp.float32)
    src = jax.random.randint(k_src, (E,), 0, N, jnp.int32)
    dst = jax.random.randint(k_dst, (E,), 0, N, jnp.int32)
    gap_edge_index = jnp.stack([src, dst], axis=0)                     # [2, E]

    params = init_params(k_p, HIDDEN)

    out = gap_aware_attention(x, gap_edge_index, params, HEADS)
    out = jax.block_until_ready(out)

    ref = reference(x, gap_edge_index, params, HEADS)
    assert out.shape == (N, HIDDEN)
    # bf16 MXU operands with f32 accumulation -> compare at bf16-level tolerance
    max_err = float(jnp.max(jnp.abs(out - ref)))
    assert jnp.allclose(out, ref, atol=2e-2, rtol=2e-2), f"mismatch vs reference: {max_err}"

    print("KERNEL_OK")
</pallas_src>

<mosaic_0001>
module attributes {stable_mosaic.version = 11 : i64} {
  func.func @gap_attn_kernel(%arg0: i32, %arg1: memref<16x128xf32, #tpu.memory_space<any>>, %arg2: memref<128x384xbf16, #tpu.memory_space<any>>, %arg3: memref<128x128xbf16, #tpu.memory_space<any>>, %arg4: memref<1x384xf32, #tpu.memory_space<vmem>>, %arg5: memref<1x128xf32, #tpu.memory_space<vmem>>, %arg6: memref<128x1xi32, #tpu.memory_space<vmem>>, %arg7: memref<1x128xi32, #tpu.memory_space<vmem>>, %arg8: memref<8x1xi32, #tpu.memory_space<vmem>>, %arg9: memref<8x1xi32, #tpu.memory_space<vmem>>, %arg10: memref<1x8xi32, #tpu.memory_space<vmem>>, %arg11: memref<16x128xf32, #tpu.memory_space<vmem>>, %arg12: memref<16x128xf32, #tpu.memory_space<vmem>>, %arg13: memref<16x384xbf16, #tpu.memory_space<vmem>>, %arg14: memref<128x128xf32, #tpu.memory_space<vmem>>, %arg15: memref<1x128xf32, #tpu.memory_space<vmem>>, %arg16: memref<1x128xf32, #tpu.memory_space<vmem>>) attributes {dimension_semantics = [#tpu.dimension_semantics<arbitrary>], iteration_bounds = array<i64: 1>, scalar_prefetch = 0 : i64, scratch_operands = 5 : i64, tpu.core_type = #tpu.core_type<tc>, window_params = [{}, {}, {}, {pipeline_mode = #tpu.pipeline_mode<synchronous>, transform_indices = @transform_3, window_bounds = array<i64: 1, 384>}, {pipeline_mode = #tpu.pipeline_mode<synchronous>, transform_indices = @transform_4, window_bounds = array<i64: 1, 128>}, {pipeline_mode = #tpu.pipeline_mode<synchronous>, transform_indices = @transform_5, window_bounds = array<i64: 128, 1>}, {pipeline_mode = #tpu.pipeline_mode<synchronous>, transform_indices = @transform_6, window_bounds = array<i64: 1, 128>}, {transform_indices = @transform_7, window_bounds = array<i64: 8, 1>}, {transform_indices = @transform_8, window_bounds = array<i64: 8, 1>}, {transform_indices = @transform_9, window_bounds = array<i64: 1, 8>}, {pipeline_mode = #tpu.pipeline_mode<synchronous>, transform_indices = @transform_10, window_bounds = array<i64: 16, 128>}]} {
    %c0_i32 = arith.constant 0 : i32
    %0 = arith.cmpi eq, %arg0, %c0_i32 : i32
    %1 = arith.extui %0 : i1 to i32
    %c0_i32_0 = arith.constant 0 : i32
    %2 = arith.cmpi ne, %1, %c0_i32_0 : i32
    scf.if %2 {
      "tpu.region"() ({
        %83 = tpu.sem_alloc : memref<!tpu.dma_semaphore, #tpu.memory_space<semaphore_mem>>
        tpu.enqueue_dma source(%arg1 : memref<16x128xf32, #tpu.memory_space<any>>) target(%arg12 : memref<16x128xf32, #tpu.memory_space<vmem>>) target_semaphore(%83 : memref<!tpu.dma_semaphore, #tpu.memory_space<semaphore_mem>>)
        tpu.wait_dma2 semaphore(%83 : memref<!tpu.dma_semaphore, #tpu.memory_space<semaphore_mem>>) src(%arg1 : memref<16x128xf32, #tpu.memory_space<any>>) dst(%arg12 : memref<16x128xf32, #tpu.memory_space<vmem>>)
        tpu.yield
      }) : () -> ()
      "tpu.region"() ({
        %alloca = memref.alloca() : memref<128x384xbf16, #tpu.memory_space<vmem>>
        "tpu.region"() ({
          %92 = tpu.sem_alloc : memref<!tpu.dma_semaphore, #tpu.memory_space<semaphore_mem>>
          tpu.enqueue_dma source(%arg2 : memref<128x384xbf16, #tpu.memory_space<any>>) target(%alloca : memref<128x384xbf16, #tpu.memory_space<vmem>>) target_semaphore(%92 : memref<!tpu.dma_semaphore, #tpu.memory_space<semaphore_mem>>)
          tpu.wait_dma2 semaphore(%92 : memref<!tpu.dma_semaphore, #tpu.memory_space<semaphore_mem>>) src(%arg2 : memref<128x384xbf16, #tpu.memory_space<any>>) dst(%alloca : memref<128x384xbf16, #tpu.memory_space<vmem>>)
          tpu.yield
        }) : () -> ()
        %c0_50 = arith.constant 0 : index
        %c0_51 = arith.constant 0 : index
        %83 = vector.load %arg12[%c0_50, %c0_51] : memref<16x128xf32, #tpu.memory_space<vmem>>, vector<16x128xf32>
        %84 = arith.truncf %83 : vector<16x128xf32> to vector<16x128xbf16>
        %c0_52 = arith.constant 0 : index
        %c0_53 = arith.constant 0 : index
        %85 = vector.load %alloca[%c0_52, %c0_53] : memref<128x384xbf16, #tpu.memory_space<vmem>>, vector<128x384xbf16>
        %cst_54 = arith.constant dense<0.000000e+00> : vector<16x384xf32>
        %86 = tpu.matmul %84, %85, %cst_54 {dimension_numbers = #tpu.dot_dimension_numbers<[1], [0], [0], [1], [0, 0, 1, 1], [], []>} : vector<16x128xbf16>, vector<128x384xbf16>, vector<16x384xf32> -> vector<16x384xf32>
        %c0_55 = arith.constant 0 : index
        %c0_56 = arith.constant 0 : index
        %87 = vector.load %arg4[%c0_55, %c0_56] : memref<1x384xf32, #tpu.memory_space<vmem>>, vector<1x384xf32>
        %88 = vector.broadcast %87 : vector<1x384xf32> to vector<16x384xf32>
        %89 = arith.addf %86, %88 : vector<16x384xf32>
        %90 = arith.truncf %89 : vector<16x384xf32> to vector<16x384xbf16>
        %c0_57 = arith.constant 0 : index
        %c0_58 = arith.constant 0 : index
        %91 = vector.load %arg13[%c0_57, %c0_58] : memref<16x384xbf16, #tpu.memory_space<vmem>>, vector<16x384xbf16>
        tpu.vector_store %arg13[%c0_57, %c0_58], %90 {strides = array<i32>} : memref<16x384xbf16, #tpu.memory_space<vmem>>, vector<16x384xbf16>,
        tpu.yield
      }) : () -> ()
      %c0_35 = arith.constant 0 : index
      %c0_36 = arith.constant 0 : index
      %69 = vector.load %arg6[%c0_35, %c0_36] : memref<128x1xi32, #tpu.memory_space<vmem>>, vector<128x1xi32>
      %c0_37 = arith.constant 0 : index
      %c0_38 = arith.constant 0 : index
      %70 = vector.load %arg7[%c0_37, %c0_38] : memref<1x128xi32, #tpu.memory_space<vmem>>, vector<1x128xi32>
      %71 = vector.broadcast %69 : vector<128x1xi32> to vector<128x128xi32>
      %72 = vector.broadcast %70 : vector<1x128xi32> to vector<128x128xi32>
      %73 = arith.cmpi eq, %71, %72 : vector<128x128xi32>
      %74 = arith.extui %73 : vector<128x128xi1> to vector<128x128xi32>
      %75 = arith.sitofp %74 : vector<128x128xi32> to vector<128x128xf32>
      %c0_39 = arith.constant 0 : index
      %c0_40 = arith.constant 0 : index
      %76 = vector.load %arg14[%c0_39, %c0_40] : memref<128x128xf32, #tpu.memory_space<vmem>>, vector<128x128xf32>
      tpu.vector_store %arg14[%c0_39, %c0_40], %75 {strides = array<i32>} : memref<128x128xf32, #tpu.memory_space<vmem>>, vector<128x128xf32>,
      %cst_41 = arith.constant 0.000000e+00 : f32
      %77 = vector.broadcast %cst_41 : f32 to vector<16x128xf32>
      %c0_42 = arith.constant 0 : index
      %c0_43 = arith.constant 0 : index
      %78 = vector.load %arg11[%c0_42, %c0_43] : memref<16x128xf32, #tpu.memory_space<vmem>>, vector<16x128xf32>
      tpu.vector_store %arg11[%c0_42, %c0_43], %77 {strides = array<i32>} : memref<16x128xf32, #tpu.memory_space<vmem>>, vector<16x128xf32>,
      %cst_44 = arith.constant -1.000000e+30 : f32
      %79 = vector.broadcast %cst_44 : f32 to vector<1x128xf32>
      %c0_45 = arith.constant 0 : index
      %c0_46 = arith.constant 0 : index
      %80 = vector.load %arg15[%c0_45, %c0_46] : memref<1x128xf32, #tpu.memory_space<vmem>>, vector<1x128xf32>
      tpu.vector_store %arg15[%c0_45, %c0_46], %79 {strides = array<i32>} : memref<1x128xf32, #tpu.memory_space<vmem>>, vector<1x128xf32>,
      %cst_47 = arith.constant 0.000000e+00 : f32
      %81 = vector.broadcast %cst_47 : f32 to vector<1x128xf32>
      %c0_48 = arith.constant 0 : index
      %c0_49 = arith.constant 0 : index
      %82 = vector.load %arg16[%c0_48, %c0_49] : memref<1x128xf32, #tpu.memory_space<vmem>>, vector<1x128xf32>
      tpu.vector_store %arg16[%c0_48, %c0_49], %81 {strides = array<i32>} : memref<1x128xf32, #tpu.memory_space<vmem>>, vector<1x128xf32>,
    } else {
    }
    %c0 = arith.constant 0 : index
    %c0_1 = arith.constant 0 : index
    %3 = vector.load %arg8[%c0, %c0_1] : memref<8x1xi32, #tpu.memory_space<vmem>>, vector<8x1xi32>
    %c0_2 = arith.constant 0 : index
    %c0_3 = arith.constant 0 : index
    %4 = vector.load %arg9[%c0_2, %c0_3] : memref<8x1xi32, #tpu.memory_space<vmem>>, vector<8x1xi32>
    %c0_4 = arith.constant 0 : index
    %c0_5 = arith.constant 0 : index
    %5 = vector.load %arg10[%c0_4, %c0_5] : memref<1x8xi32, #tpu.memory_space<vmem>>, vector<1x8xi32>
    %c0_i32_6 = arith.constant 0 : i32
    %6 = vector.broadcast %c0_i32_6 : i32 to vector<8x1xi32>
    %7 = arith.cmpi sge, %4, %6 : vector<8x1xi32>
    %8 = tpu.iota {dimensions = array<i32: 1>} : vector<8x16xi32>
    %9 = vector.broadcast %3 : vector<8x1xi32> to vector<8x16xi32>
    %10 = arith.cmpi eq, %9, %8 : vector<8x16xi32>
    %11 = arith.extui %10 : vector<8x16xi1> to vector<8x16xi32>
    %12 = arith.sitofp %11 : vector<8x16xi32> to vector<8x16xf32>
    %13 = arith.truncf %12 : vector<8x16xf32> to vector<8x16xbf16>
    %14 = vector.broadcast %4 : vector<8x1xi32> to vector<8x16xi32>
    %15 = arith.cmpi eq, %14, %8 : vector<8x16xi32>
    %16 = arith.extui %15 : vector<8x16xi1> to vector<8x16xi32>
    %17 = arith.sitofp %16 : vector<8x16xi32> to vector<8x16xf32>
    %18 = arith.truncf %17 : vector<8x16xf32> to vector<8x16xbf16>
    %19 = tpu.iota {dimensions = array<i32: 0>} : vector<16x8xi32>
    %20 = vector.broadcast %5 : vector<1x8xi32> to vector<16x8xi32>
    %21 = arith.cmpi eq, %20, %19 : vector<16x8xi32>
    %22 = arith.extui %21 : vector<16x8xi1> to vector<16x8xi32>
    %23 = arith.sitofp %22 : vector<16x8xi32> to vector<16x8xf32>
    %24 = arith.truncf %23 : vector<16x8xf32> to vector<16x8xbf16>
    %c0_7 = arith.constant 0 : index
    %c0_8 = arith.constant 0 : index
    %25 = vector.load %arg13[%c0_7, %c0_8] : memref<16x384xbf16, #tpu.memory_space<vmem>>, vector<16x128xbf16>
    %c0_9 = arith.constant 0 : index
    %c128 = arith.constant 128 : index
    %26 = vector.load %arg13[%c0_9, %c128] : memref<16x384xbf16, #tpu.memory_space<vmem>>, vector<16x128xbf16>
    %c0_10 = arith.constant 0 : index
    %c256 = arith.constant 256 : index
    %27 = vector.load %arg13[%c0_10, %c256] : memref<16x384xbf16, #tpu.memory_space<vmem>>, vector<16x128xbf16>
    %cst = arith.constant dense<0.000000e+00> : vector<8x128xf32>
    %28 = tpu.matmul %18, %25, %cst {dimension_numbers = #tpu.dot_dimension_numbers<[1], [0], [0], [1], [0, 0, 1, 1], [], []>} : vector<8x16xbf16>, vector<16x128xbf16>, vector<8x128xf32> -> vector<8x128xf32>
    %cst_11 = arith.constant dense<0.000000e+00> : vector<8x128xf32>
    %29 = tpu.matmul %13, %26, %cst_11 {dimension_numbers = #tpu.dot_dimension_numbers<[1], [0], [0], [1], [0, 0, 1, 1], [], []>} : vector<8x16xbf16>, vector<16x128xbf16>, vector<8x128xf32> -> vector<8x128xf32>
    %cst_12 = arith.constant dense<0.000000e+00> : vector<8x128xf32>
    %30 = tpu.matmul %13, %27, %cst_12 {dimension_numbers = #tpu.dot_dimension_numbers<[1], [0], [0], [1], [0, 0, 1, 1], [], []>} : vector<8x16xbf16>, vector<16x128xbf16>, vector<8x128xf32> -> vector<8x128xf32>
    %31 = arith.mulf %28, %29 : vector<8x128xf32>
    %c0_13 = arith.constant 0 : index
    %c0_14 = arith.constant 0 : index
    %32 = vector.load %arg14[%c0_13, %c0_14] : memref<128x128xf32, #tpu.memory_space<vmem>>, vector<128x128xf32>
    %cst_15 = arith.constant dense<0.000000e+00> : vector<8x128xf32>
    %33 = tpu.matmul %31, %32, %cst_15 {dimension_numbers = #tpu.dot_dimension_numbers<[1], [0], [0], [1], [0, 0, 1, 1], [], []>} : vector<8x128xf32>, vector<128x128xf32>, vector<8x128xf32> -> vector<8x128xf32>
    %cst_16 = arith.constant -1.000000e+30 : f32
    %34 = vector.shape_cast %7 : vector<8x1xi1> to vector<8x1xi1>
    %35 = vector.broadcast %34 : vector<8x1xi1> to vector<8x128xi1>
    %36 = vector.broadcast %cst_16 : f32 to vector<8x128xf32>
    %37 = arith.select %35, %33, %36 : vector<8x128xi1>, vector<8x128xf32>
    %c0_17 = arith.constant 0 : index
    %c0_18 = arith.constant 0 : index
    %38 = vector.load %arg15[%c0_17, %c0_18] : memref<1x128xf32, #tpu.memory_space<vmem>>, vector<1x128xf32>
    %cst_19 = arith.constant dense<0xFF800000> : vector<128xf32>
    %39 = vector.multi_reduction <maximumf>, %37, %cst_19 [0] : vector<8x128xf32> to vector<128xf32>
    %40 = vector.shape_cast %39 : vector<128xf32> to vector<1x128xf32>
    %41 = arith.maximumf %38, %40 : vector<1x128xf32>
    %42 = arith.subf %38, %41 : vector<1x128xf32>
    %43 = math.exp %42 : vector<1x128xf32>
    %44 = vector.broadcast %41 : vector<1x128xf32> to vector<8x128xf32>
    %45 = arith.subf %37, %44 : vector<8x128xf32>
    %46 = math.exp %45 : vector<8x128xf32>
    %cst_20 = arith.constant 0.000000e+00 : f32
    %47 = vector.shape_cast %7 : vector<8x1xi1> to vector<8x1xi1>
    %48 = vector.broadcast %47 : vector<8x1xi1> to vector<8x128xi1>
    %49 = vector.broadcast %cst_20 : f32 to vector<8x128xf32>
    %50 = arith.select %48, %46, %49 : vector<8x128xi1>, vector<8x128xf32>
    %c0_21 = arith.constant 0 : index
    %c0_22 = arith.constant 0 : index
    %51 = vector.load %arg16[%c0_21, %c0_22] : memref<1x128xf32, #tpu.memory_space<vmem>>, vector<1x128xf32>
    %52 = arith.mulf %43, %51 : vector<1x128xf32>
    %cst_23 = arith.constant dense<0.000000e+00> : vector<128xf32>
    %53 = vector.multi_reduction <add>, %50, %cst_23 [0] : vector<8x128xf32> to vector<128xf32>
    %54 = vector.shape_cast %53 : vector<128xf32> to vector<1x128xf32>
    %55 = arith.addf %52, %54 : vector<1x128xf32>
    %c0_24 = arith.constant 0 : index
    %c0_25 = arith.constant 0 : index
    %56 = vector.load %arg16[%c0_24, %c0_25] : memref<1x128xf32, #tpu.memory_space<vmem>>, vector<1x128xf32>
    tpu.vector_store %arg16[%c0_24, %c0_25], %55 {strides = array<i32>} : memref<1x128xf32, #tpu.memory_space<vmem>>, vector<1x128xf32>,
    %c0_26 = arith.constant 0 : index
    %c0_27 = arith.constant 0 : index
    %57 = vector.load %arg15[%c0_26, %c0_27] : memref<1x128xf32, #tpu.memory_space<vmem>>, vector<1x128xf32>
    tpu.vector_store %arg15[%c0_26, %c0_27], %41 {strides = array<i32>} : memref<1x128xf32, #tpu.memory_space<vmem>>, vector<1x128xf32>,
    %58 = arith.mulf %50, %30 : vector<8x128xf32>
    %59 = arith.truncf %58 : vector<8x128xf32> to vector<8x128xbf16>
    %cst_28 = arith.constant dense<0.000000e+00> : vector<16x128xf32>
    %60 = tpu.matmul %24, %59, %cst_28 {dimension_numbers = #tpu.dot_dimension_numbers<[1], [0], [0], [1], [0, 0, 1, 1], [], []>} : vector<16x8xbf16>, vector<8x128xbf16>, vector<16x128xf32> -> vector<16x128xf32>
    %c0_29 = arith.constant 0 : index
    %c0_30 = arith.constant 0 : index
    %61 = vector.load %arg11[%c0_29, %c0_30] : memref<16x128xf32, #tpu.memory_space<vmem>>, vector<16x128xf32>
    %62 = vector.broadcast %43 : vector<1x128xf32> to vector<16x128xf32>
    %63 = arith.mulf %62, %61 : vector<16x128xf32>
    %64 = arith.addf %63, %60 : vector<16x128xf32>
    %c0_31 = arith.constant 0 : index
    %c0_32 = arith.constant 0 : index
    %65 = vector.load %arg11[%c0_31, %c0_32] : memref<16x128xf32, #tpu.memory_space<vmem>>, vector<16x128xf32>
    tpu.vector_store %arg11[%c0_31, %c0_32], %64 {strides = array<i32>} : memref<16x128xf32, #tpu.memory_space<vmem>>, vector<16x128xf32>,
    %c0_i32_33 = arith.constant 0 : i32
    %66 = arith.cmpi eq, %arg0, %c0_i32_33 : i32
    %67 = arith.extui %66 : i1 to i32
    %c0_i32_34 = arith.constant 0 : i32
    %68 = arith.cmpi ne, %67, %c0_i32_34 : i32
    scf.if %68 {
      "tpu.region"() ({
        %alloca = memref.alloca() : memref<128x128xbf16, #tpu.memory_space<vmem>>
        "tpu.region"() ({
          %83 = tpu.sem_alloc : memref<!tpu.dma_semaphore, #tpu.memory_space<semaphore_mem>>
          tpu.enqueue_dma source(%arg3 : memref<128x128xbf16, #tpu.memory_space<any>>) target(%alloca : memref<128x128xbf16, #tpu.memory_space<vmem>>) target_semaphore(%83 : memref<!tpu.dma_semaphore, #tpu.memory_space<semaphore_mem>>)
          tpu.wait_dma2 semaphore(%83 : memref<!tpu.dma_semaphore, #tpu.memory_space<semaphore_mem>>) src(%arg3 : memref<128x128xbf16, #tpu.memory_space<any>>) dst(%alloca : memref<128x128xbf16, #tpu.memory_space<vmem>>)
          tpu.yield
        }) : () -> ()
        %c0_35 = arith.constant 0 : index
        %c0_36 = arith.constant 0 : index
        %69 = vector.load %arg11[%c0_35, %c0_36] : memref<16x128xf32, #tpu.memory_space<vmem>>, vector<16x128xf32>
        %c0_37 = arith.constant 0 : index
        %c0_38 = arith.constant 0 : index
        %70 = vector.load %arg16[%c0_37, %c0_38] : memref<1x128xf32, #tpu.memory_space<vmem>>, vector<1x128xf32>
        %71 = tpu.reciprocal %70 {approx = true} : vector<1x128xf32> -> vector<1x128xf32>
        %72 = vector.broadcast %71 : vector<1x128xf32> to vector<16x128xf32>
        %73 = arith.mulf %69, %72 : vector<16x128xf32>
        %74 = arith.truncf %73 : vector<16x128xf32> to vector<16x128xbf16>
        %c0_39 = arith.constant 0 : index
        %c0_40 = arith.constant 0 : index
        %75 = vector.load %alloca[%c0_39, %c0_40] : memref<128x128xbf16, #tpu.memory_space<vmem>>, vector<128x128xbf16>
        %cst_41 = arith.constant dense<0.000000e+00> : vector<16x128xf32>
        %76 = tpu.matmul %74, %75, %cst_41 {dimension_numbers = #tpu.dot_dimension_numbers<[1], [0], [0], [1], [0, 0, 1, 1], [], []>} : vector<16x128xbf16>, vector<128x128xbf16>, vector<16x128xf32> -> vector<16x128xf32>
        %c0_42 = arith.constant 0 : index
        %c0_43 = arith.constant 0 : index
        %77 = vector.load %arg12[%c0_42, %c0_43] : memref<16x128xf32, #tpu.memory_space<vmem>>, vector<16x128xf32>
        %78 = arith.addf %77, %76 : vector<16x128xf32>
        %c0_44 = arith.constant 0 : index
        %c0_45 = arith.constant 0 : index
        %79 = vector.load %arg5[%c0_44, %c0_45] : memref<1x128xf32, #tpu.memory_space<vmem>>, vector<1x128xf32>
        %80 = vector.broadcast %79 : vector<1x128xf32> to vector<16x128xf32>
        %81 = arith.addf %78, %80 : vector<16x128xf32>
        %c0_46 = arith.constant 0 : index
        %c0_47 = arith.constant 0 : index
        %82 = vector.load %arg11[%c0_46, %c0_47] : memref<16x128xf32, #tpu.memory_space<vmem>>, vector<16x128xf32>
        tpu.vector_store %arg11[%c0_46, %c0_47], %81 {strides = array<i32>} : memref<16x128xf32, #tpu.memory_space<vmem>>, vector<16x128xf32>,
        tpu.yield
      }) : () -> ()
    } else {
    }
    return
  }
  func.func @transform_3(%arg0: i32) -> (i32, i32) {
    %c0_i32 = arith.constant 0 : i32
    %c0_i32_0 = arith.constant 0 : i32
    %c0_i32_1 = arith.constant 0 : i32
    return %c0_i32, %c0_i32_0 : i32, i32
  }
  func.func @transform_4(%arg0: i32) -> (i32, i32) {
    %c0_i32 = arith.constant 0 : i32
    %c0_i32_0 = arith.constant 0 : i32
    %c0_i32_1 = arith.constant 0 : i32
    return %c0_i32, %c0_i32_0 : i32, i32
  }
  func.func @transform_5(%arg0: i32) -> (i32, i32) {
    %c0_i32 = arith.constant 0 : i32
    %c0_i32_0 = arith.constant 0 : i32
    %c0_i32_1 = arith.constant 0 : i32
    return %c0_i32, %c0_i32_0 : i32, i32
  }
  func.func @transform_6(%arg0: i32) -> (i32, i32) {
    %c0_i32 = arith.constant 0 : i32
    %c0_i32_0 = arith.constant 0 : i32
    %c0_i32_1 = arith.constant 0 : i32
    return %c0_i32, %c0_i32_0 : i32, i32
  }
  func.func @transform_7(%arg0: i32) -> (i32, i32) {
    %c0_i32 = arith.constant 0 : i32
    %c0_i32_0 = arith.constant 0 : i32
    return %arg0, %c0_i32 : i32, i32
  }
  func.func @transform_8(%arg0: i32) -> (i32, i32) {
    %c0_i32 = arith.constant 0 : i32
    %c0_i32_0 = arith.constant 0 : i32
    return %arg0, %c0_i32 : i32, i32
  }
  func.func @transform_9(%arg0: i32) -> (i32, i32) {
    %c0_i32 = arith.constant 0 : i32
    %c0_i32_0 = arith.constant 0 : i32
    return %c0_i32, %arg0 : i32, i32
  }
  func.func @transform_10(%arg0: i32) -> (i32, i32) {
    %c0_i32 = arith.constant 0 : i32
    %c0_i32_0 = arith.constant 0 : i32
    %c0_i32_1 = arith.constant 0 : i32
    return %c0_i32, %c0_i32_0 : i32, i32
  }
}

</mosaic_0001>

<bundles_post_ra>
// kernel: tpu_custom_call.1
= control target key start
LH: loop header
LB: loop body
LE: loop exit
PB: predicated region body
PF: predicated region fallthrough
CT: control target
= control target key end

     0   :  { %15 = vsyncpa [#allocation8], 0  ;;  %s1437_s0 = inlined_call_operand.vmem [shape: f32[16,128], index: 0, kind: input, shape index: {}]   ;;  %s1438_s1 = inlined_call_operand.hbm [shape: bf16[128,384], index: 1, kind: input, shape index: {}]   ;;  %s1439_s2 = inlined_call_operand.vmem [shape: bf16[128,128], index: 2, kind: input, shape index: {}]   ;;  %s1440_s3 = inlined_call_operand.vmem [shape: f32[1,384], index: 3, kind: input, shape index: {}]   ;;  %s1441_s4 = inlined_call_operand.vmem [shape: f32[1,128], index: 4, kind: input, shape index: {}]   ;;  %s1442_s5 = inlined_call_operand.vmem [shape: s32[128,1], index: 5, kind: input, shape index: {}]   ;;  %s1443_s6 = inlined_call_operand.vmem [shape: s32[1,128], index: 6, kind: input, shape index: {}]   ;;  %s1444_s7 = inlined_call_operand.vmem [shape: s32[8,1], index: 7, kind: input, shape index: {}]   ;;  %s1445_s8 = inlined_call_operand.vmem [shape: s32[8,1], index: 8, kind: input, shape index: {}]   ;;  %s1446_s9 = inlined_call_operand.vmem [shape: s32[1,8], index: 9, kind: input, shape index: {}]   ;;  %s1447_s10 = inlined_call_operand.hbm [shape: f32[16,128], index: 10, kind: output, shape index: {}]  }
   0x1   :  { %v1273_v0 = vld [vmem:[%s1437_s0] sm:$0xff]  ;;  %v1278_v1 = vld [vmem:[%s1437_s0 + $0x8] sm:$0xff] }
   0x2   :  { %78 = vsyncadd [#allocation9], 256 }
   0x3   :  { %1183 = dma.done.wait [#allocation9], 256 }
   0x4   :  { %1184 = vsyncadd [#allocation9], 4294967040 }
   0x5   :  { %s86_s17 = sld [smem:[#allocation0]]   ;;  %s1191_s18 = smov [#allocation11]  }
   0x6   :  { %s94_s19 = sshll.u32 %s1191_s18, 4  ;;  %s1192_s20 = smov 384   ;;  %s95_s19 = int_to_ptr.vmem [resolvable:$true] %s94_s19 }
   0x7   :  { %98 = sst [smem:[#allocation14]] %s1192_s20  ;;  %s1193_s21 = smov 3  }
   0x8   :  { %100 = sst [smem:[#allocation14 + $0x1]] %s1192_s20  ;;  %s1194_s22 = smov 64  }
   0x9   :  { %102 = sst [smem:[#allocation14 + $0x2]] %s1193_s21  ;;  %s1195_s24 = smov 128  }
   0xa   :  { %104 = sst [smem:[#allocation14 + $0x3]] %s1194_s22  ;;  %s1196_s0 = smov 2  }
   0xb   :  { %s918_s23 = sshll.u32 %s86_s17, 26  ;;  %106 = sst [smem:[#allocation14 + $0x4]] %s1195_s24 }
   0xc   :  { %s919_s25 = sadd.s32 134217728, %s918_s23  ;;  %108 = sst [smem:[#allocation14 + $0x5]] %s1196_s0 }
   0xd   :  { %s1197_s26 = smov 192   ;;  %112 = sst [smem:[#allocation14 + $0x7]] %s1194_s22 }
   0xe   :  { %110 = sst [smem:[#allocation14 + $0x6]] %s1197_s26  ;;  %s1198_s27 = smov 4  }
   0xf   :  { %114 = sst [smem:[#allocation14 + $0x8]] %s1198_s27  ;;  %s1199_s28 = smov [#allocation12]  }
  0x10   :  { %s1200_s29 = smov [#allocation13]  }
  0x11   :  { %116 = dma.general %s1438_s1, 3072, %s95_s19, %s1199_s28, %s1200_s29, [#allocation14], %s919_s25, 0  }
  0x12   :  { %1185 = dma.done.wait [#allocation12], 3072 }
  0x13   :  { %1186 = vsyncadd [#allocation12], 4294964224  ;;  %v125_v2 = vld [vmem:[#allocation11 + $0x8] sm:$0xff]  ;;  %v124_v3 = vld [vmem:[#allocation11] sm:$0xff]  ;;  %v1201_v5 = vmov 0.0   ;;  %v1202_v10 = vmov 0   ;;  %v123_v28 = vpack.c.bf16 %v1278_v1, %v1273_v0  ;;  %v150_v29 = vlaneseq }
  0x14   :  { %v126_v4 = vld [vmem:[#allocation11 + $0x10] sm:$0xff]  ;;  %165 = vmatprep.subr.bf16.mxu0 %v125_v2  ;;  %1006 = vmatprep.subr.bf16.mxu1 %v1201_v5  ;;  %v128_v6 = vld [vmem:[#allocation11 + $0x20] sm:$0xff]  ;;  %v127_v7 = vld [vmem:[#allocation11 + $0x18] sm:$0xff]  ;;  %vm1203_vm0 = vmmov 0   ;;  %v1204_v57 = vmov 0   ;;  %v1205_v58 = vmov 0.0  }
  0x15   :  { %166 = vmatpush1.bf16.msra.mxu0 %v124_v3  ;;  %1007 = vmatpush3.bf16.msra.mxu1 %v126_v4  ;;  %v129_v8 = vld [vmem:[#allocation11 + $0x28] sm:$0xff]  ;;  %v131_v9 = vld [vmem:[#allocation11 + $0x38] sm:$0xff]  ;;  %v130_v11 = vld [vmem:[#allocation11 + $0x30] sm:$0xff]  ;;  %v1286_v30 = vshrl.u32 %v150_v29, 7  ;;  %391 = vst [vmem:[#allocation6] sm:$0x1] %v1205_v58 }
  0x16   :  { %167 = vmatprep.subr.bf16.mxu0 %v128_v6  ;;  %1008 = vmatprep.subr.bf16.mxu1 %v1201_v5  ;;  %v132_v12 = vld [vmem:[#allocation11 + $0x40] sm:$0xff]  ;;  %v134_v13 = vld [vmem:[#allocation11 + $0x50] sm:$0xff]  ;;  %v133_v14 = vld [vmem:[#allocation11 + $0x48] sm:$0xff]  ;;  %vm1206_vm1 = vmmov 0   ;;  %vm429_vm4 = vcmask 130048  }
  0x17   :  { %197 = vmatprep.mubr.bf16.mxu0 %v1202_v10  ;;  %1022 = vmatprep.mubr.msk.bf16.mxu1 %vm1203_vm0, %v1201_v5  ;;  %v135_v15 = vld [vmem:[#allocation11 + $0x58] sm:$0xff]  ;;  %v137_v16 = vld [vmem:[#allocation11 + $0x68] sm:$0xff]  ;;  %v136_v17 = vld [vmem:[#allocation11 + $0x60] sm:$0xff]  ;;  %v160_v31 = vsub.s32 2, %v1286_v30  ;;  %v1293_v33 = vsub.s32 0, %v1286_v30  ;;  %v156_v34 = vsub.s32 1, %v1286_v30 }
  0x18   :  { %v138_v18 = vld [vmem:[#allocation11 + $0x70] sm:$0xff]  ;;  %v140_v19 = vld [vmem:[#allocation11 + $0x80] sm:$0xff]  ;;  %v139_v20 = vld [vmem:[#allocation11 + $0x78] sm:$0xff]  ;;  %1154 = vset.pattern.permute.xlu1 %v1204_v57  ;;  %1153 = vset.pattern.permute.xlu0 %v1204_v57 }
  0x19   :  { %168 = vmatpush1.bf16.msra.mxu0 %v127_v7  ;;  %1009 = vmatpush3.bf16.msra.mxu1 %v129_v8  ;;  %v141_v21 = vld [vmem:[#allocation11 + $0x88] sm:$0xff]  ;;  %v143_v22 = vld [vmem:[#allocation11 + $0x98] sm:$0xff]  ;;  %v142_v23 = vld [vmem:[#allocation11 + $0x90] sm:$0xff] }
  0x1a   :  { %169 = vmatprep.subr.bf16.mxu0 %v131_v9  ;;  %1010 = vmatprep.subr.bf16.mxu1 %v1201_v5  ;;  %v144_v24 = vld [vmem:[#allocation11 + $0xa0] sm:$0xff]  ;;  %v146_v25 = vld [vmem:[#allocation11 + $0xb0] sm:$0xff]  ;;  %v145_v26 = vld [vmem:[#allocation11 + $0xa8] sm:$0xff] }
  0x1b   :  { %v147_v27 = vld [vmem:[#allocation11 + $0xb8] sm:$0xff]  ;;  %v148_v32 = vld [vmem:[%s1440_s3] sm:$0x7]  ;;  %v258_v62 = vld [vmem:[%s1442_s5 + $0x18] sm:$0xff] }
  0x1c   :  { %v161_v35 = vrot.slane %v148_v32, %v160_v31  ;;  %v153_v36 = vrot.slane %v148_v32, %v1293_v33  ;;  %v157_v39 = vrot.slane %v148_v32, %v156_v34  ;;  %v393_v55 = vld [vmem:[%s1445_s8] sm:$0xff]  ;;  %v256_v60 = vld [vmem:[%s1442_s5 + $0x8] sm:$0xff]  ;;  %v257_v61 = vld [vmem:[%s1442_s5 + $0x10] sm:$0xff] }
  0x1d   :  { %170 = vmatpush1.bf16.msra.mxu0 %v130_v11  ;;  %1011 = vmatpush3.bf16.msra.mxu1 %v132_v12  ;;  %v255_v56 = vld [vmem:[%s1442_s5] sm:$0xff]  ;;  %v260_v2 = vld [vmem:[%s1442_s5 + $0x28] sm:$0xff]  ;;  %v261_v3 = vld [vmem:[%s1442_s5 + $0x30] sm:$0xff]  ;;  %vm395_vm2 = vcmp.ge.s32.totalorder %v393_v55, 0 }
  0x1e   :  { %171 = vmatprep.subr.bf16.mxu0 %v134_v13  ;;  %1012 = vmatprep.subr.bf16.mxu1 %v1201_v5  ;;  %v392_v59 = vld [vmem:[%s1444_s7] sm:$0xff]  ;;  %v262_v4 = vld [vmem:[%s1442_s5 + $0x38] sm:$0xff]  ;;  %v264_v6 = vld [vmem:[%s1442_s5 + $0x48] sm:$0xff]  ;;  %v643_v13 = vsel %vm395_vm2, 1, %v1204_v57 }
  0x1f   :  { %406 = vperm.xlu0 %1153, %v393_v55   ;;  %273 = vperm.xlu1 %1154, %v255_v56   ;;  %v259_v63 = vld [vmem:[%s1442_s5 + $0x20] sm:$0xff]  ;;  %v265_v7 = vld [vmem:[%s1442_s5 + $0x50] sm:$0xff]  ;;  %v266_v8 = vld [vmem:[%s1442_s5 + $0x58] sm:$0xff] }
  0x20   :  { %v267_v9 = vld [vmem:[%s1442_s5 + $0x60] sm:$0xff]  ;;  %v268_v10 = vld [vmem:[%s1442_s5 + $0x68] sm:$0xff]  ;;  %v269_v11 = vld [vmem:[%s1442_s5 + $0x70] sm:$0xff] }
  0x21   :  { %172 = vmatpush1.bf16.msra.mxu0 %v133_v14  ;;  %1013 = vmatpush3.bf16.msra.mxu1 %v135_v15  ;;  %v270_v12 = vld [vmem:[%s1442_s5 + $0x78] sm:$0xff]  ;;  %v397_v14 = vand.u32 127, %v150_v29  ;;  %v1208_v29 = vmov 1.0|1.0  }
  0x22   :  { %173 = vmatprep.subr.bf16.mxu0 %v137_v16  ;;  %1014 = vmatprep.subr.bf16.mxu1 %v1201_v5 }
  0x23   :  { %399 = vperm.xlu0 %1153, %v392_v59   ;;  %276 = vperm.xlu1 %1154, %v256_v60  }
  0x25   :  { %174 = vmatpush1.bf16.msra.mxu0 %v136_v17  ;;  %1015 = vmatpush3.bf16.msra.mxu1 %v138_v18 }
  0x26   :  { %175 = vmatprep.subr.bf16.mxu0 %v140_v19  ;;  %1016 = vmatprep.subr.bf16.mxu1 %v1201_v5 }
  0x27   :  { %279 = vperm.xlu0 %1153, %v257_v61   ;;  %282 = vperm.xlu1 %1154, %v258_v62  }
  0x29   :  { %176 = vmatpush1.bf16.msra.mxu0 %v139_v20  ;;  %1017 = vmatpush3.bf16.msra.mxu1 %v141_v21 }
  0x2a   :  { %177 = vmatprep.subr.bf16.mxu0 %v143_v22  ;;  %1018 = vmatprep.subr.bf16.mxu1 %v1201_v5  ;;  %v920_v22 = vld [vmem:[%s1443_s6] ss:$0 sm:$0xff] }
  0x2b   :  { %285 = vperm.xlu0 %1153, %v259_v63   ;;  %288 = vperm.xlu1 %1154, %v260_v2  }
  0x2d   :  { %178 = vmatpush1.bf16.msra.mxu0 %v142_v23  ;;  %1019 = vmatpush3.bf16.msra.mxu1 %v144_v24  ;;  %v1207_v24 = vmov 0.0|0.0  }
  0x2e   :  { %179 = vmatprep.subr.bf16.mxu0 %v146_v25  ;;  %1020 = vmatprep.subr.bf16.mxu1 %v1201_v5  ;;  %v263_v5 = vld [vmem:[%s1442_s5 + $0x40] sm:$0xff] }
  0x2f   :  { %291 = vperm.xlu0 %1153, %v261_v3   ;;  %294 = vperm.xlu1 %1154, %v262_v4  }
  0x31   :  { %180 = vmatpush1.bf16.msra.mxu0 %v145_v26  ;;  %1021 = vmatpush3.bf16.msra.mxu1 %v147_v27 }
  0x32   :  { %1026 = vmatprep.subr.bf16.mxu1 %v1205_v58  ;;  %1038 = vmatprep.subr.bf16.mxu0 %v1205_v58 }
  0x33   :  { %297 = vperm.xlu0 %1153, %v263_v5   ;;  %300 = vperm.xlu1 %1154, %v264_v6  }
  0x34   :  { %198 = vmatmul.mubr.bf16.vlgmr.msra.gmra.mrb[0].mxu0 %v123_v28  ;;  %1023 = vmatmul.mubr.bf16.vlgmr.msra.gmra.mrb[0].mxu1 %v123_v28 }
  0x35   :  { %1028 = vmatprep.mubr.msk.bf16.mxu1 %vm1206_vm1, %v1205_v58  ;;  %1040 = vmatprep.mubr.msk.bf16.mxu0 %vm1206_vm1, %v1205_v58 }
  0x37   :  { %303 = vperm.xlu0 %1153, %v265_v7   ;;  %306 = vperm.xlu1 %1154, %v266_v8  }
  0x3b   :  { %309 = vperm.xlu0 %1153, %v267_v9   ;;  %312 = vperm.xlu1 %1154, %v268_v10  }
  0x3f   :  { %315 = vperm.xlu0 %1153, %v269_v11   ;;  %318 = vperm.xlu1 %1154, %v270_v12   ;;  %v414_v12 = vadd.s32 8, %v1286_v30 }
  0x43   :  { %645 = vperm.xlu0 %1153, %v643_v13   ;;  %v939_v13 = vld [vmem:[%s1446_s9] ss:$0 sm:$0xff] }
  0x9e   :  { %v407_v15 = vpop.permute.xlu0 %406  ;;  %v274_v16 = vpop.permute.xlu1 %273 }
  0x9f   :  { %vm408_vm3 = vcmp.eq.s32.totalorder %v407_v15, %v397_v14  ;;  %vm324_vm6 = vcmp.eq.s32.totalorder %v274_v16, %v920_v22 }
  0xa0   :  { %v938_v17 = vsel %vm408_vm3, 1.0, %v1205_v58 }
  0xa1   :  { %v411_v18 = vpack.c.bf16 %v938_v17, %v938_v17 }
  0xa2   :  { %v400_v19 = vpop.permute.xlu0 %399  ;;  %v277_v20 = vpop.permute.xlu1 %276 }
  0xa3   :  { %vm401_vm5 = vcmp.eq.s32.totalorder %v400_v19, %v397_v14  ;;  %vm325_vm7 = vcmp.eq.s32.totalorder %v277_v20, %v920_v22 }
  0xa4   :  { %v937_v21 = vsel %vm401_vm5, 1.0, %v1205_v58  ;;  %vm1106_vm8 = vmpackc.low %vm325_vm7, %vm324_vm6 }
  0xa5   :  { %v404_v23 = vpack.c.bf16 %v937_v21, %v937_v21 }
  0xa6   :  { %v280_v25 = vpop.permute.xlu0 %279  ;;  %v283_v26 = vpop.permute.xlu1 %282 }
  0xa7   :  { %vm326_vm9 = vcmp.eq.s32.totalorder %v280_v25, %v920_v22  ;;  %vm327_vm10 = vcmp.eq.s32.totalorder %v283_v26, %v920_v22 }
  0xa8   :  { %vm1109_vm11 = vmpackc.low %vm327_vm10, %vm326_vm9 }
  0xaa   :  { %v286_v27 = vpop.permute.xlu0 %285  ;;  %v289_v28 = vpop.permute.xlu1 %288 }
  0xab   :  { %vm328_vm12 = vcmp.eq.s32.totalorder %v286_v27, %v920_v22  ;;  %vm329_vm13 = vcmp.eq.s32.totalorder %v289_v28, %v920_v22 }
  0xac   :  { %vm1112_vm14 = vmpackc.low %vm329_vm13, %vm328_vm12 }
  0xae   :  { %v292_v31 = vpop.permute.xlu0 %291  ;;  %v295_v32 = vpop.permute.xlu1 %294 }
  0xaf   :  { %vm330_vm15 = vcmp.eq.s32.totalorder %v292_v31, %v920_v22  ;;  %vm331_vm0 = vcmp.eq.s32.totalorder %v295_v32, %v920_v22 }
  0xb0   :  { %vm1115_vm2 = vmpackc.low %vm331_vm0, %vm330_vm15  ;;  %vm419_vm15 = vcmp.eq.s32.totalorder %v939_v13, %v1286_v30  ;;  %vm420_vm0 = vcmp.eq.s32.totalorder %v939_v13, %v414_v12  ;;  %v670_v30 = vld [vmem:[#allocation6] sm:$0x1] }
  0xb1   :  { %v941_v19 = vsel %vm420_vm0, 1.0, %v1205_v58 }
  0xb2   :  { %v298_v34 = vpop.permute.xlu0 %297 }
  0xb3   :  { %vm332_vm3 = vcmp.eq.s32.totalorder %v298_v34, %v920_v22 }
 0x107   :  { %v199_v37 = vpop.f32.mrb[0].mxu0  ;;  %v242_v38 = vpop.f32.mrb[0].mxu1 }
 0x108   :  { %v243_v40 = vadd.f32 %v242_v38, %v161_v35  ;;  %v201_v41 = vpop.f32.mrb[1].mxu0  ;;  %v1024_v42 = vpop.f32.mrb[1].mxu1  ;;  %v200_v45 = vadd.f32 %v199_v37, %v153_v36 }
 0x109   :  { %v203_v43 = vpop.f32.mrb[2].mxu0  ;;  %v245_v44 = vpop.f32.mrb[2].mxu1  ;;  %v1297_v50 = vadd.f32 %v201_v41, %v157_v39  ;;  %v1209_v42 = vmov -1e+30  }
 0x10a   :  { %v204_v46 = vadd.f32 %v203_v43, %v153_v36  ;;  %v246_v47 = vadd.f32 %v245_v44, %v161_v35  ;;  %v205_v48 = vpop.f32.mrb[3].mxu0  ;;  %v1025_v49 = vpop.f32.mrb[3].mxu1  ;;  %390 = vst [vmem:[#allocation5] sm:$0x1] %v1209_v42 }
 0x10b   :  { %v1299_v51 = vadd.f32 %v205_v48, %v157_v39  ;;  %v301_v35 = vpop.permute.xlu1 %300  ;;  %v304_v36 = vpop.permute.xlu0 %303 }
 0x10c   :  { %v249_v52 = vpack.c.bf16 %v204_v46, %v200_v45  ;;  %v251_v53 = vpack.c.bf16 %v246_v47, %v243_v40  ;;  %vm334_vm5 = vcmp.eq.s32.totalorder %v304_v36, %v920_v22 }
 0x10d   :  { %v250_v54 = vpack.c.bf16 %v1299_v51, %v1297_v50 }
 0x10e   :  { %1027 = vmatpush3.bf16.msra.mxu1 %v249_v52  ;;  %1039 = vmatpush3.bf16.msra.mxu0 %v251_v53 }
 0x10f   :  { %1032 = vmatprep.subr.bf16.mxu1 %v1205_v58  ;;  %1079 = vmatprep.subr.bf16.mxu0 %v1205_v58  ;;  %v307_v37 = vpop.permute.xlu1 %306  ;;  %v310_v38 = vpop.permute.xlu0 %309 }
 0x110   :  { %vm335_vm6 = vcmp.eq.s32.totalorder %v307_v37, %v920_v22 }
 0x111   :  { %1029 = vmatmul.mubr.msk.bf16.vlgmr.msra.gmra.mrb[4].mxu1 %vm429_vm4, %v411_v18  ;;  %1041 = vmatmul.mubr.msk.bf16.vlgmr.msra.gmra.mrb[4].mxu0 %vm429_vm4, %v404_v23  ;;  %vm1121_vm7 = vmpackc.low %vm335_vm6, %vm334_vm5  ;;  %v649_v4 = vld [vmem:[#allocation5] sm:$0x1]  ;;  %v940_v18 = vsel %vm419_vm15, 1.0, %v1205_v58 }
 0x112   :  { %1033 = vmatpush3.bf16.msra.mxu1 %v250_v54  ;;  %1034 = vmatprep.mubr.msk.bf16.mxu1 %vm1206_vm1, %v1205_v58 }
 0x113   :  { %1105 = vmatprep.subr.bf16.mxu1 %v1207_v24  ;;  %1081 = vmatprep.mubr.msk.bf16.mxu0 %vm1206_vm1, %v1205_v58  ;;  %v313_v39 = vpop.permute.xlu1 %312  ;;  %v316_v40 = vpop.permute.xlu0 %315 }
 0x114   :  { %vm337_vm9 = vcmp.eq.s32.totalorder %v313_v39, %v920_v22 }
 0x117   :  { %v319_v41 = vpop.permute.xlu1 %318  ;;  %v646_v56 = vpop.permute.xlu0 %645 }
 0x118   :  { %vm339_vm12 = vcmp.eq.s32.totalorder %v319_v41, %v920_v22 }
 0x119   :  { %1035 = vmatmul.mubr.msk.bf16.vlgmr.msra.gmra.mrb[8].mxu1 %vm429_vm4, %v404_v23 }
 0x11a   :  { %1107 = vmatpush3.bf16.msk.msra.mxu1 %vm1106_vm8, %v1208_v29  ;;  %1076 = vmatprep.mubr.msk.f32.mxu1 %vm1206_vm1, %v1205_v58  ;;  %vm333_vm1 = vcmp.eq.s32.totalorder %v301_v35, %v920_v22  ;;  %vm336_vm8 = vcmp.eq.s32.totalorder %v310_v38, %v920_v22 }
 0x11b   :  { %1108 = vmatprep.subr.bf16.mxu1 %v1207_v24  ;;  %vm1118_vm4 = vmpackc.low %vm333_vm1, %vm332_vm3  ;;  %vm683_vm3 = vcmask 64512  }
 0x11c   :  { %vm1124_vm10 = vmpackc.low %vm337_vm9, %vm336_vm8 }
 0x11e   :  { %1110 = vmatpush3.bf16.msk.msra.mxu1 %vm1109_vm11, %v1208_v29  ;;  %vm338_vm11 = vcmp.eq.s32.totalorder %v316_v40, %v920_v22 }
 0x11f   :  { %1111 = vmatprep.subr.bf16.mxu1 %v1207_v24  ;;  %vm1127_vm13 = vmpackc.low %vm339_vm12, %vm338_vm11 }
 0x122   :  { %1113 = vmatpush3.bf16.msk.msra.mxu1 %vm1112_vm14, %v1208_v29  ;;  %vm647_vm14 = vcmp.eq.s32.totalorder %v646_v56, 1 }
 0x123   :  { %1114 = vmatprep.subr.bf16.mxu1 %v1207_v24 }
 0x126   :  { %1116 = vmatpush3.bf16.msk.msra.mxu1 %vm1115_vm2, %v1208_v29  ;;  %vm687_vm2 = vcmask 1043456  }
 0x127   :  { %1117 = vmatprep.subr.bf16.mxu1 %v1207_v24 }
 0x12a   :  { %1119 = vmatpush3.bf16.msk.msra.mxu1 %vm1118_vm4, %v1208_v29 }
 0x12b   :  { %1120 = vmatprep.subr.bf16.mxu1 %v1207_v24 }
 0x12e   :  { %1122 = vmatpush3.bf16.msk.msra.mxu1 %vm1121_vm7, %v1208_v29 }
 0x12f   :  { %1123 = vmatprep.subr.bf16.mxu1 %v1207_v24 }
 0x132   :  { %1125 = vmatpush3.bf16.msk.msra.mxu1 %vm1124_vm10, %v1208_v29 }
 0x133   :  { %1126 = vmatprep.subr.bf16.mxu1 %v1207_v24  ;;  %v425_v24 = vpack.c.bf16 %v941_v19, %v940_v18 }
 0x136   :  { %1128 = vmatpush3.bf16.msk.msra.mxu1 %vm1127_vm13, %v1208_v29 }
 0x1e4   :  { %v467_v43 = vpop.f32.mrb[4].mxu1  ;;  %v550_v47 = vpop.f32.mrb[4].mxu0 }
 0x1e5   :  { %v1030_v44 = vpop.f32.mrb[5].mxu1  ;;  %v1042_v48 = vpop.f32.mrb[5].mxu0 }
 0x1e6   :  { %v470_v45 = vpop.f32.mrb[6].mxu1  ;;  %v553_v49 = vpop.f32.mrb[6].mxu0 }
 0x1e7   :  { %v1031_v46 = vpop.f32.mrb[7].mxu1  ;;  %v1043_v50 = vpop.f32.mrb[7].mxu0 }
 0x1ec   :  { %v510_v51 = vpop.f32.mrb[8].mxu1 }
 0x1ed   :  { %v556_v52 = vmul.f32 %v510_v51, %v467_v43  ;;  %v1036_v53 = vpop.f32.mrb[9].mxu1 }
 0x1ee   :  { %v513_v54 = vpop.f32.mrb[10].mxu1 }
 0x1ef   :  { %v1037_v55 = vpop.f32.mrb[11].mxu1  ;;  %1077 = vmatmul.mubr.f32.vlgmr.msra.gmra.mrb[12].mxu1 %v556_v52 }
 0x2c2   :  { %v639_v57 = vpop.f32.mrb[12].mxu1 }
 0x2c3   :  { %v648_v59 = vsel %vm647_vm14, %v639_v57, -1e+30  ;;  %v1078_v60 = vpop.f32.mrb[13].mxu1 }
 0x2c4   :  { %v650_v61 = vrot.slane %v648_v59, 4 }
 0x2c6   :  { %v651_v62 = vmax.f32 %v648_v59, %v650_v61 }
 0x2c8   :  { %v652_v63 = vrot.slane %v651_v62, 2 }
 0x2ca   :  { %v653_v2 = vmax.f32 %v651_v62, %v652_v63 }
 0x2cc   :  { %v654_v3 = vrot.slane %v653_v2, 1 }
 0x2ce   :  { %v655_v5 = vmax.f32 %v653_v2, %v654_v3 }
 0x2d0   :  { %v656_v6 = vmax.f32 %v649_v4, %v655_v5 }
 0x2d2   :  { %v664_v7 = vrot.slane %v656_v6, %v1293_v33  ;;  %680 = vst [vmem:[#allocation5] sm:$0x1] %v656_v6  ;;  %v657_v10 = vsub.f32 %v649_v4, %v656_v6 }
 0x2d4   :  { %v666_v8 = vsub.f32 %v648_v59, %v664_v7  ;;  %v658_v11 = vmul.f32 1.442695, %v657_v10 }
 0x2d6   :  { %v667_v9 = vmul.f32 1.442695, %v666_v8 }
 0x2d8   :  { %1155 = vpow2.f32 %v667_v9 }
 0x2d9   :  { %1157 = vpow2.f32 %v658_v11 }
 0x2e2   :  { %v1156_v14 = vpop.eup %1155 }
 0x2e3   :  { %v669_v15 = vsel %vm647_vm14, %v1156_v14, 0.0  ;;  %v1158_v26 = vpop.eup %1157 }
 0x2e4   :  { %v672_v16 = vrot.slane %v669_v15, 4  ;;  %v681_v17 = vmul.f32 %v669_v15, %v550_v47  ;;  %v671_v28 = vmul.f32 %v1158_v26, %v670_v30  ;;  %v738_v32 = vrot.slane %v1158_v26, %v1293_v33 }
 0x2e6   :  { %v673_v20 = vadd.f32 %v672_v16, %v669_v15  ;;  %v682_v21 = vpack.c.bf16 %v681_v17, %v681_v17  ;;  %v740_v34 = vmul.f32 0.0, %v738_v32 }
 0x2e8   :  { %v674_v22 = vrot.slane %v673_v20, 2  ;;  %v689_v23 = vsel %vm687_vm2, %v682_v21, 0 }
 0x2e9   :  { %1080 = vmatpush3.bf16.msra.mxu0 %v689_v23 }
 0x2ea   :  { %v675_v25 = vadd.f32 %v674_v22, %v673_v20 }
 0x2ec   :  { %v676_v27 = vrot.slane %v675_v25, 1  ;;  %1082 = vmatmul.mubr.msk.bf16.vlgmr.msra.gmra.mrb[8].mxu0 %vm683_vm3, %v425_v24 }
 0x2ee   :  { %v677_v29 = vadd.f32 %v676_v27, %v675_v25 }
 0x2f0   :  { %v678_v31 = vadd.f32 %v677_v29, %v671_v28 }
 0x2f2   :  { %679 = vst [vmem:[#allocation6] sm:$0x1] %v678_v31 }
 0x3bf   :  { %v725_v58 = vpop.f32.mrb[8].mxu0 }
 0x3c0   :  { %v742_v35 = vadd.f32 %v740_v34, %v725_v58  ;;  %v1083_v36 = vpop.f32.mrb[9].mxu0 }
 0x3c1   :  { %v728_v37 = vpop.f32.mrb[10].mxu0 }
 0x3c2   :  { %744 = vst [vmem:[#allocation7] sm:$0xff] %v742_v35  ;;  %v743_v38 = vadd.f32 %v740_v34, %v728_v37  ;;  %v1084_v39 = vpop.f32.mrb[11].mxu0 }
 0x3c4   :  { %745 = vst [vmem:[#allocation7 + $0x8] sm:$0xff] %v743_v38 }
 0x3c5   :  { %v781_v40 = vld [vmem:[%s1439_s2] sm:$0xff]  ;;  %v783_v41 = vld [vmem:[%s1439_s2 + $0x8] sm:$0xff]  ;;  %v785_v42 = vld [vmem:[%s1439_s2 + $0x10] sm:$0xff] }
 0x3c6   :  { %v787_v43 = vld [vmem:[%s1439_s2 + $0x18] sm:$0xff]  ;;  %v789_v44 = vld [vmem:[%s1439_s2 + $0x20] sm:$0xff]  ;;  %v791_v45 = vld [vmem:[%s1439_s2 + $0x28] sm:$0xff] }
 0x3c7   :  { %v793_v46 = vld [vmem:[%s1439_s2 + $0x30] sm:$0xff]  ;;  %v795_v47 = vld [vmem:[%s1439_s2 + $0x38] sm:$0xff] }
 0x3c8   :  { %804 = vsyncadd [#allocation16], 1024 }
 0x3c9   :  { %1187 = dma.done.wait [#allocation16], 1024 }
 0x3ca   :  { %1188 = vsyncadd [#allocation16], 4294966272  ;;  %v1210_v48 = vmov 0.0   ;;  %vm1211_vm1 = vmmov 0   ;;  %v811_v49 = vld [vmem:[#allocation6] sm:$0x1] }
 0x3cb   :  { %1085 = vmatprep.subr.bf16.mxu0 %v1210_v48  ;;  %1101 = vmatprep.mubr.msk.bf16.mxu0 %vm1211_vm1, %v1210_v48  ;;  %1159 = vrcp.f32 %v811_v49  ;;  %v809_v52 = vld [vmem:[#allocation7] sm:$0xff]  ;;  %v810_v53 = vld [vmem:[#allocation7 + $0x8] sm:$0xff]  ;;  %v946_v59 = vld [vmem:[%s1441_s4] ss:$0 sm:$0xff]  ;;  %s1212_s16 = smov [#allocation7]  }
 0x3cc   :  { %1086 = vmatpush3.bf16.msra.mxu0 %v781_v40  ;;  %s891_s17 = sshll.u32 %s1212_s16, 4  ;;  %s892_s17 = int_to_ptr.vmem [resolvable:$true] %s891_s17 }
 0x3cd   :  { %1087 = vmatprep.subr.bf16.mxu0 %v1210_v48  ;;  %s1161_s18 = scalar_lea.vmem %s892_s17, 256  ;;  %p1166_p1 = scmp.lt.s32.totalorder %s892_s17, %s892_s17 }
 0x3ce   :  { %p1162_p0 = scmp.ne.s32.totalorder %s892_s17, %s1161_s18  ;;  %p1167_p2 = scmp.lt.s32.totalorder %s1161_s18, %s1161_s18 }
 0x3d0   :  { %1088 = vmatpush3.bf16.msra.mxu0 %v783_v41  ;;  %p1168_p3 = por %p1167_p2, %p1166_p1 }
 0x3d1   :  { %1089 = vmatprep.subr.bf16.mxu0 %v1210_v48 }
 0x3d2   :  { %p1169_p4 = pnand %p1168_p3, %p1162_p0 }
 0x3d4   :  { %1090 = vmatpush3.bf16.msra.mxu0 %v785_v42 }
 0x3d5   :  { %1091 = vmatprep.subr.bf16.mxu0 %v1210_v48  ;;  %v1160_v50 = vpop.eup %1159 }
 0x3d6   :  { %v817_v51 = vrot.slane %v1160_v50, %v1293_v33 }
 0x3d8   :  { %1092 = vmatpush3.bf16.msra.mxu0 %v787_v43  ;;  %v819_v54 = vmul.f32 %v817_v51, %v809_v52  ;;  %v820_v55 = vmul.f32 %v817_v51, %v810_v53 }
 0x3d9   :  { %1093 = vmatprep.subr.bf16.mxu0 %v1210_v48 }
 0x3da   :  { %v821_v56 = vpack.c.bf16 %v820_v55, %v819_v54 }
 0x3dc   :  { %1094 = vmatpush3.bf16.msra.mxu0 %v789_v44 }
 0x3dd   :  { %1095 = vmatprep.subr.bf16.mxu0 %v1210_v48 }
 0x3e0   :  { %1096 = vmatpush3.bf16.msra.mxu0 %v791_v45 }
 0x3e1   :  { %1097 = vmatprep.subr.bf16.mxu0 %v1210_v48 }
 0x3e4   :  { %1098 = vmatpush3.bf16.msra.mxu0 %v793_v46 }
 0x3e5   :  { %1099 = vmatprep.subr.bf16.mxu0 %v1210_v48 }
 0x3e8   :  { %1100 = vmatpush3.bf16.msra.mxu0 %v795_v47 }
 0x3eb   :  { %1102 = vmatmul.mubr.bf16.vlgmr.msra.gmra.mrb[12].mxu0 %v821_v56 }
 0x4be   :  { %v864_v57 = vpop.f32.mrb[12].mxu0 }
 0x4bf   :  { %v873_v60 = vadd.f32 %v864_v57, %v1273_v0  ;;  %v1103_v61 = vpop.f32.mrb[13].mxu0 }
 0x4c0   :  { %v867_v33 = vpop.f32.mrb[14].mxu0 }
 0x4c1   :  { %v882_v62 = vadd.f32 %v946_v59, %v873_v60  ;;  %v874_v63 = vadd.f32 %v867_v33, %v1278_v1  ;;  %v1104_v2 = vpop.f32.mrb[15].mxu0 }
 0x4c3   :  { %884 = vst [vmem:[#allocation7] sm:$0xff] %v882_v62  ;;  %v883_v3 = vadd.f32 %v946_v59, %v874_v63 }
 0x4c5   :  { %885 = vst [vmem:[#allocation7 + $0x8] sm:$0xff] %v883_v3 }
 0x4c6   :  { %1172 = shalt.err (!%p1169_p4)
}
 0x4c7   :  { %s1173_s8 = scalar_lea.hbm %s1447_s10, 256 }
 0x4c8   :  { %p1174_p5 = scmp.ne.s32.totalorder %s1447_s10, %s1173_s8  ;;  %p1177_p6 = scmp.lt.u32.totalorder %s1173_s8, %s1447_s10 }
 0x4ca   :  { %p1179_p7 = pnand %p1177_p6, %p1174_p5 }
 0x4cc   :  { %1182 = shalt.err (!%p1179_p7)
}
 0x4cd   :  { %s1213_s6 = smov 128   ;;  %s1214_s22 = smov 8  }
 0x4ce   :  { %897 = dma.vmem_to_hbm [thread:$0]  %s892_s17, 256, %s1447_s10, [#allocation8], %s1213_s6, %s1213_s6, %s1214_s22  }
 0x4cf   :  { %1189 = dma.done.wait [#allocation8], 256  }
 0x4d0   :  { %1190 = vsyncadd [#allocation8], 4294967040 }
 0x4d1   :  { %901 = vsyncpa [#allocation8], 1 }

</bundles_post_ra>
